<compile_context>
chip_gen: v7x
topology: tpu7x:2x2x1
jax: 0.10.0
libtpu: 0.0.40
codegen_flags: <defaults>
</compile_context>

<pallas_src>
import jax
import jax.numpy as jnp
from jax.experimental import pallas as pl
from jax.experimental.pallas import tpu as pltpu


LANE = 128     # TPU lane width (last dim)
SUB = 8        # sublane granularity (second-to-last dim)
TILE_R = 512   # batch rows per grid step (512 * 128 = 65536 batch elems/tile)


def _mlp_kernel(p_ref, x_ref, o_ref):
    # p_ref: (13,) f32 in SMEM: [w1[0,0..2], w1[1,0..2], b1[0..2], w2[0..2], b2]
    # x_ref: (2, tile_r, 128) VMEM — lane-dense plane per input feature
    # o_ref: (tile_r, 128)    VMEM — lane-dense output (single real feature)
    x0 = x_ref[0]
    x1 = x_ref[1]
    acc = jnp.full(o_ref.shape, p_ref[12], dtype=jnp.float32)       # + b2
    for j in range(3):                                              # hidden units
        h = x0 * p_ref[j] + x1 * p_ref[3 + j] + p_ref[6 + j]        # x @ W1 + b1
        h = jnp.maximum(h, 0.0)                                     # ReLU
        acc = acc + h * p_ref[9 + j]                                # (.) @ W2
    o_ref[...] = acc


def _round_up(n, m):
    return ((n + m - 1) // m) * m


@jax.jit
def mlp_forward(x, w1, b1, w2, b2):
    """x: (B, 2) f32. w1: (2, 3), b1: (3,), w2: (3, 1), b2: (1,). Returns (B, 1)."""
    B = x.shape[0]

    rows = -(-B // LANE)                          # batch rows at 128 lanes each
    tile_r = min(TILE_R, _round_up(rows, SUB))    # tile rows (multiple of 8)
    rows_p = _round_up(rows, tile_r)
    Bp = rows_p * LANE

    # Lane-dense batch-major planes: xp[f, r, l] = x[r*128 + l, f] (zero pad).
    xp = (jnp.zeros((2, Bp), jnp.float32)
          .at[:, :B].set(x.T)
          .reshape(2, rows_p, LANE))

    # All 13 parameters as SMEM scalars (stays resident across the grid).
    params = jnp.concatenate(
        [w1.reshape(-1), b1.reshape(-1), w2.reshape(-1), b2.reshape(-1)]
    ).astype(jnp.float32)

    out_p = pl.pallas_call(
        _mlp_kernel,
        out_shape=jax.ShapeDtypeStruct((rows_p, LANE), jnp.float32),
        grid=(rows_p // tile_r,),
        in_specs=[
            pl.BlockSpec(memory_space=pltpu.MemorySpace.SMEM),     # params
            pl.BlockSpec((2, tile_r, LANE), lambda i: (0, i, 0)),  # x planes
        ],
        out_specs=pl.BlockSpec((tile_r, LANE), lambda i: (i, 0)),
        compiler_params=pltpu.CompilerParams(
            dimension_semantics=("parallel",),
        ),
    )(params, xp)

    # Unpad: batch index = row*128 + lane in the lane-dense slab.
    return out_p.reshape(-1)[:B].reshape(B, 1)


def _init_params(key):
    """Deterministic init mirroring PyTorch nn.Linear default (U[-1/sqrt(fan_in), +])."""
    k1, k2, k3, k4 = jax.random.split(key, 4)
    bound1 = 1.0 / jnp.sqrt(2.0)
    bound2 = 1.0 / jnp.sqrt(3.0)
    # Stored as (in_features, out_features), i.e. transposed PyTorch weight.
    w1 = jax.random.uniform(k1, (2, 3), jnp.float32, -bound1, bound1)
    b1 = jax.random.uniform(k2, (3,), jnp.float32, -bound1, bound1)
    w2 = jax.random.uniform(k3, (3, 1), jnp.float32, -bound2, bound2)
    b2 = jax.random.uniform(k4, (1,), jnp.float32, -bound2, bound2)
    return w1, b1, w2, b2


if __name__ == "__main__":
    key = jax.random.PRNGKey(0)
    kx, kx2, kp = jax.random.split(key, 3)

    w1, b1, w2, b2 = _init_params(kp)

    def ref_fn(x):
        return jnp.maximum(x @ w1 + b1, 0.0) @ w2 + b2

    # Small primary check (matches module spec: batch=8, in_features=2).
    B = 8
    x = jax.random.normal(kx, (B, 2), jnp.float32)
    out = jax.block_until_ready(mlp_forward(x, w1, b1, w2, b2))
    assert out.shape == (B, 1), out.shape
    assert jnp.allclose(out, ref_fn(x), atol=1e-5, rtol=1e-5)

    # Secondary check exercising a multi-step batch grid + padding tail.
    B2 = 70_000
    x2 = jax.random.normal(kx2, (B2, 2), jnp.float32)
    out2 = jax.block_until_ready(mlp_forward(x2, w1, b1, w2, b2))
    assert out2.shape == (B2, 1), out2.shape
    assert jnp.allclose(out2, ref_fn(x2), atol=1e-5, rtol=1e-5)

    print("KERNEL_OK")
</pallas_src>

<mosaic_0001>
module attributes {stable_mosaic.version = 11 : i64} {
  func.func @_mlp_kernel(%arg0: i32, %arg1: memref<13xf32, #tpu.memory_space<smem>>, %arg2: memref<2x8x128xf32, #tpu.memory_space<vmem>>, %arg3: memref<8x128xf32, #tpu.memory_space<vmem>>) attributes {dimension_semantics = [#tpu.dimension_semantics<parallel>], iteration_bounds = array<i64: 1>, scalar_prefetch = 0 : i64, scratch_operands = 0 : i64, tpu.core_type = #tpu.core_type<tc>, window_params = [{transform_indices = @transform_0, window_bounds = array<i64: 13>}, {transform_indices = @transform_1, window_bounds = array<i64: 2, 8, 128>}, {transform_indices = @transform_2, window_bounds = array<i64: 8, 128>}]} {
    %c0 = arith.constant 0 : index
    %c0_0 = arith.constant 0 : index
    %c0_1 = arith.constant 0 : index
    %0 = vector.load %arg2[%c0, %c0_0, %c0_1] : memref<2x8x128xf32, #tpu.memory_space<vmem>>, vector<1x8x128xf32>
    %1 = vector.shape_cast %0 : vector<1x8x128xf32> to vector<8x128xf32>
    %c1 = arith.constant 1 : index
    %c0_2 = arith.constant 0 : index
    %c0_3 = arith.constant 0 : index
    %2 = vector.load %arg2[%c1, %c0_2, %c0_3] : memref<2x8x128xf32, #tpu.memory_space<vmem>>, vector<1x8x128xf32>
    %3 = vector.shape_cast %2 : vector<1x8x128xf32> to vector<8x128xf32>
    %c12 = arith.constant 12 : index
    %4 = memref.load %arg1[%c12] : memref<13xf32, #tpu.memory_space<smem>>
    %5 = vector.broadcast %4 : f32 to vector<8x128xf32>
    %c0_4 = arith.constant 0 : index
    %6 = memref.load %arg1[%c0_4] : memref<13xf32, #tpu.memory_space<smem>>
    %7 = vector.broadcast %6 : f32 to vector<8x128xf32>
    %8 = arith.mulf %1, %7 : vector<8x128xf32>
    %c3 = arith.constant 3 : index
    %9 = memref.load %arg1[%c3] : memref<13xf32, #tpu.memory_space<smem>>
    %10 = vector.broadcast %9 : f32 to vector<8x128xf32>
    %11 = arith.mulf %3, %10 : vector<8x128xf32>
    %12 = arith.addf %8, %11 : vector<8x128xf32>
    %c6 = arith.constant 6 : index
    %13 = memref.load %arg1[%c6] : memref<13xf32, #tpu.memory_space<smem>>
    %14 = vector.broadcast %13 : f32 to vector<8x128xf32>
    %15 = arith.addf %12, %14 : vector<8x128xf32>
    %cst = arith.constant 0.000000e+00 : f32
    %16 = vector.broadcast %cst : f32 to vector<8x128xf32>
    %17 = arith.maximumf %15, %16 : vector<8x128xf32>
    %c9 = arith.constant 9 : index
    %18 = memref.load %arg1[%c9] : memref<13xf32, #tpu.memory_space<smem>>
    %19 = vector.broadcast %18 : f32 to vector<8x128xf32>
    %20 = arith.mulf %17, %19 : vector<8x128xf32>
    %21 = arith.addf %5, %20 : vector<8x128xf32>
    %c1_5 = arith.constant 1 : index
    %22 = memref.load %arg1[%c1_5] : memref<13xf32, #tpu.memory_space<smem>>
    %23 = vector.broadcast %22 : f32 to vector<8x128xf32>
    %24 = arith.mulf %1, %23 : vector<8x128xf32>
    %c4 = arith.constant 4 : index
    %25 = memref.load %arg1[%c4] : memref<13xf32, #tpu.memory_space<smem>>
    %26 = vector.broadcast %25 : f32 to vector<8x128xf32>
    %27 = arith.mulf %3, %26 : vector<8x128xf32>
    %28 = arith.addf %24, %27 : vector<8x128xf32>
    %c7 = arith.constant 7 : index
    %29 = memref.load %arg1[%c7] : memref<13xf32, #tpu.memory_space<smem>>
    %30 = vector.broadcast %29 : f32 to vector<8x128xf32>
    %31 = arith.addf %28, %30 : vector<8x128xf32>
    %cst_6 = arith.constant 0.000000e+00 : f32
    %32 = vector.broadcast %cst_6 : f32 to vector<8x128xf32>
    %33 = arith.maximumf %31, %32 : vector<8x128xf32>
    %c10 = arith.constant 10 : index
    %34 = memref.load %arg1[%c10] : memref<13xf32, #tpu.memory_space<smem>>
    %35 = vector.broadcast %34 : f32 to vector<8x128xf32>
    %36 = arith.mulf %33, %35 : vector<8x128xf32>
    %37 = arith.addf %21, %36 : vector<8x128xf32>
    %c2 = arith.constant 2 : index
    %38 = memref.load %arg1[%c2] : memref<13xf32, #tpu.memory_space<smem>>
    %39 = vector.broadcast %38 : f32 to vector<8x128xf32>
    %40 = arith.mulf %1, %39 : vector<8x128xf32>
    %c5 = arith.constant 5 : index
    %41 = memref.load %arg1[%c5] : memref<13xf32, #tpu.memory_space<smem>>
    %42 = vector.broadcast %41 : f32 to vector<8x128xf32>
    %43 = arith.mulf %3, %42 : vector<8x128xf32>
    %44 = arith.addf %40, %43 : vector<8x128xf32>
    %c8 = arith.constant 8 : index
    %45 = memref.load %arg1[%c8] : memref<13xf32, #tpu.memory_space<smem>>
    %46 = vector.broadcast %45 : f32 to vector<8x128xf32>
    %47 = arith.addf %44, %46 : vector<8x128xf32>
    %cst_7 = arith.constant 0.000000e+00 : f32
    %48 = vector.broadcast %cst_7 : f32 to vector<8x128xf32>
    %49 = arith.maximumf %47, %48 : vector<8x128xf32>
    %c11 = arith.constant 11 : index
    %50 = memref.load %arg1[%c11] : memref<13xf32, #tpu.memory_space<smem>>
    %51 = vector.broadcast %50 : f32 to vector<8x128xf32>
    %52 = arith.mulf %49, %51 : vector<8x128xf32>
    %53 = arith.addf %37, %52 : vector<8x128xf32>
    %c0_8 = arith.constant 0 : index
    %c0_9 = arith.constant 0 : index
    %54 = vector.load %arg3[%c0_8, %c0_9] : memref<8x128xf32, #tpu.memory_space<vmem>>, vector<8x128xf32>
    tpu.vector_store %arg3[%c0_8, %c0_9], %53 {strides = array<i32>} : memref<8x128xf32, #tpu.memory_space<vmem>>, vector<8x128xf32>,
    return
  }
  func.func @transform_0(%arg0: i32) -> i32 {
    %c0_i32 = arith.constant 0 : i32
    %c0_i32_0 = arith.constant 0 : i32
    return %c0_i32 : i32
  }
  func.func @transform_1(%arg0: i32) -> (i32, i32, i32) {
    %c0_i32 = arith.constant 0 : i32
    %c0_i32_0 = arith.constant 0 : i32
    %c0_i32_1 = arith.constant 0 : i32
    return %c0_i32, %arg0, %c0_i32_0 : i32, i32, i32
  }
  func.func @transform_2(%arg0: i32) -> (i32, i32) {
    %c0_i32 = arith.constant 0 : i32
    %c0_i32_0 = arith.constant 0 : i32
    return %arg0, %c0_i32 : i32, i32
  }
}

</mosaic_0001>

<bundles_post_ra>
// kernel: mlp_forward.1
= control target key start
LH: loop header
LB: loop body
LE: loop exit
PB: predicated region body
PF: predicated region fallthrough
CT: control target
= control target key end

     0   :  { %7 = vsyncpa [#allocation3], 0  ;;  %s142_s0 = inlined_call_operand.vmem [shape: f32[13], index: 0, kind: input, shape index: {}]   ;;  %s143_s1 = inlined_call_operand.vmem [shape: f32[2,8,128], index: 1, kind: input, shape index: {}]   ;;  %s144_s2 = inlined_call_operand.vmem [shape: f32[8,128], index: 2, kind: output, shape index: {}]  }
   0x1   :  { %s14_s11 = sshll.u32 %s142_s0, 4  ;;  %s15_s11 = int_to_ptr.vmem [resolvable:$true] %s14_s11 }
   0x2   :  { %s94_s12 = scalar_lea.vmem %s15_s11, 16  ;;  %p99_p1 = scmp.lt.s32.totalorder %s15_s11, %s15_s11 }
   0x3   :  { %p95_p0 = scmp.ne.s32.totalorder %s15_s11, %s94_s12  ;;  %p100_p2 = scmp.lt.s32.totalorder %s94_s12, %s94_s12 }
   0x5   :  { %p101_p3 = por %p100_p2, %p99_p1 }
   0x7   :  { %p102_p4 = pnand %p101_p3, %p95_p0 }
   0x9   :  { %105 = shalt.err (!%p102_p4)
}
   0xa   :  { %s108_s13 = smov [#allocation2]  }
   0xb   :  { %17 = dma.vmem_to_smem %s15_s11, 16, %s108_s13, [#allocation3]  }
   0xc   :  { %106 = dma.done.wait [#allocation3], 16  }
   0xd   :  { %107 = vsyncadd [#allocation3], 4294967280 }
   0xe   :  { %23 = sfence }
   0xf   :  { %s29_s14 = sld [smem:[#allocation2]]  ;;  %s82_s15 = sld [smem:[#allocation2 + $0x3]]  ;;  %v24_v0 = vld [vmem:[%s143_s1] sm:$0xff]  ;;  %v80_v1 = vld [vmem:[%s143_s1 + $0x8] sm:$0xff] }
  0x10   :  { %s83_s16 = sld [smem:[#allocation2 + $0x6]]  ;;  %s85_s17 = sld [smem:[#allocation2 + $0x1]] }
  0x11   :  { %s86_s18 = sld [smem:[#allocation2 + $0x4]]  ;;  %s87_s19 = sld [smem:[#allocation2 + $0x7]] }
  0x12   :  { %s130_s21 = sld [smem:[#allocation2 + $0x9]]  ;;  %s89_s22 = sld [smem:[#allocation2 + $0x2]] }
  0x13   :  { %s90_s25 = sld [smem:[#allocation2 + $0x5]]  ;;  %s91_s26 = sld [smem:[#allocation2 + $0x8]] }
  0x14   :  { %s135_s27 = sld [smem:[#allocation2 + $0xc]]  ;;  %s88_s28 = sld [smem:[#allocation2 + $0xa]] }
  0x15   :  { %v30_v2 = vstv %s29_s14  ;;  %v33_v4 = vstv %s82_s15  ;;  %s92_s29 = sld [smem:[#allocation2 + $0xb]] }
  0x16   :  { %v31_v3 = vmul.f32 %v30_v2, %v24_v0  ;;  %v34_v5 = vmul.f32 %v80_v1, %v33_v4  ;;  %v45_v6 = vstv %s85_s17  ;;  %v37_v7 = vstv %s83_s16 }
  0x17   :  { %v46_v8 = vmul.f32 %v45_v6, %v24_v0  ;;  %v48_v9 = vstv %s86_s18  ;;  %v52_v13 = vstv %s87_s19 }
  0x18   :  { %v35_v10 = vadd.f32 %v34_v5, %v31_v3  ;;  %v49_v11 = vmul.f32 %v80_v1, %v48_v9  ;;  %v60_v12 = vstv %s89_s22  ;;  %v41_v19 = vstv %s130_s21 }
  0x19   :  { %v61_v14 = vmul.f32 %v60_v12, %v24_v0  ;;  %v63_v15 = vstv %s90_s25  ;;  %v67_v20 = vstv %s91_s26 }
  0x1a   :  { %v38_v16 = vadd.f32 %v37_v7, %v35_v10  ;;  %v50_v17 = vadd.f32 %v49_v11, %v46_v8  ;;  %v64_v18 = vmul.f32 %v80_v1, %v63_v15  ;;  %v28_v24 = vstv %s135_s27 }
  0x1b   :  { %v56_v25 = vstv %s88_s28  ;;  %v71_v29 = vstv %s92_s29 }
  0x1c   :  { %v39_v21 = vmax.f32 %v38_v16, 0.0  ;;  %v53_v22 = vadd.f32 %v52_v13, %v50_v17  ;;  %v65_v23 = vadd.f32 %v64_v18, %v61_v14 }
  0x1e   :  { %v42_v26 = vmul.f32 %v41_v19, %v39_v21  ;;  %v54_v27 = vmax.f32 %v53_v22, 0.0  ;;  %v68_v28 = vadd.f32 %v67_v20, %v65_v23 }
  0x20   :  { %v43_v30 = vadd.f32 %v42_v26, %v28_v24  ;;  %v57_v31 = vmul.f32 %v56_v25, %v54_v27  ;;  %v69_v32 = vmax.f32 %v68_v28, 0.0 }
  0x22   :  { %v58_v33 = vadd.f32 %v57_v31, %v43_v30  ;;  %v72_v34 = vmul.f32 %v71_v29, %v69_v32 }
  0x24   :  { %v73_v35 = vadd.f32 %v72_v34, %v58_v33 }
  0x26   :  { %74 = vst [vmem:[%s144_s2] sm:$0xff] %v73_v35 }
  0x27   :  { %79 = vsyncpa [#allocation3], 1 }

</bundles_post_ra>
